<compile_context>
chip_gen: v5e
topology: v5e:2x2
jax: 0.10.0
libtpu: 0.0.40
codegen_flags: <defaults>
</compile_context>

<pallas_src>
import jax
import jax.numpy as jnp
from jax import lax
from jax.experimental import pallas as pl
from jax.experimental.pallas import tpu as pltpu

LANE = 128      # TPU lane width (last dim)
SUBLANE = 8     # f32 sublane grain (second-to-last dim)


def _round_up(x, m):
    return ((x + m - 1) // m) * m


# --------------------------------------------------------------------------
# Pallas kernel: grid axis 0 = decode time step; weights VMEM-resident.
# --------------------------------------------------------------------------
def _make_decoder_kernel(*, n_layers, H, B, Bp, vocab, Vp):
    def kernel(*refs):
        tok_ref = refs[0]                              # SMEM (T, B) int32
        hid_in_ref = refs[1]                           # (L, Bp, H) f32
        emb_ref = refs[2]                              # (vocab, E) bf16
        idx = 3
        layers = []
        for _ in range(n_layers):
            layers.append(refs[idx:idx + 3])           # Wx, Wh (bf16), b (f32)
            idx += 3
        wv_ref, bv_ref = refs[idx], refs[idx + 1]      # (H, Vp) bf16, (1, Vp) f32
        logits_ref = refs[idx + 2]                     # out block (1, Bp, Vp) f32
        hid_out_ref = refs[idx + 3]                    # out (L, Bp, H) f32, resident

        t = pl.program_id(0)

        # Seed the resident hidden-state carry from the caller's hidden once.
        @pl.when(t == 0)
        def _():
            hid_out_ref[...] = hid_in_ref[...]

        # ---- in-kernel embedding gather: token ids from SMEM, one-hot matmul
        # against the VMEM-resident table (exact: one nonzero product per row).
        row_ids = lax.broadcasted_iota(jnp.int32, (Bp, vocab), 0)
        col_ids = lax.broadcasted_iota(jnp.int32, (Bp, vocab), 1)
        onehot = jnp.zeros((Bp, vocab), jnp.float32)
        for b in range(B):                              # B is small & static
            tok = tok_ref[t, b]
            onehot = jnp.where((row_ids == b) & (col_ids == tok), 1.0, onehot)
        x = jnp.dot(onehot.astype(jnp.bfloat16), emb_ref[...],
                    preferred_element_type=jnp.float32)          # (Bp, E) f32
        # dropout is identity in eval mode

        # ---- stacked GRU cells, PyTorch gate order [r | z | n]
        # Packed gate columns: [r(0:H) | z(H:2H) | n_x(2H:3H) | n_h(3H:4H)].
        for l in range(n_layers):
            wx_ref, wh_ref, b_ref = layers[l]
            h = hid_out_ref[l]                                   # (Bp, H) f32
            g = (jnp.dot(x.astype(jnp.bfloat16), wx_ref[...],
                         preferred_element_type=jnp.float32)
                 + jnp.dot(h.astype(jnp.bfloat16), wh_ref[...],
                           preferred_element_type=jnp.float32)
                 + b_ref[...])                                    # (Bp, 4H) f32
            r = jax.nn.sigmoid(g[:, 0 * H:1 * H])
            z = jax.nn.sigmoid(g[:, 1 * H:2 * H])
            n = jnp.tanh(g[:, 2 * H:3 * H] + r * g[:, 3 * H:4 * H])
            h_new = (1.0 - z) * n + z * h
            hid_out_ref[l] = h_new        # in-place VMEM carry across steps
            x = h_new                     # inter-layer dropout identity (eval)

        # ---- fused embedding2vocab1/2/3: one matmul, lane-dense (Vp) store
        logits_ref[0] = (
            jnp.dot(x.astype(jnp.bfloat16), wv_ref[...],
                    preferred_element_type=jnp.float32)
            + bv_ref[...]
        )

    return kernel


# --------------------------------------------------------------------------
# One-time parameter preparation (hoisted out of the decode path)
# --------------------------------------------------------------------------
def prepare_params(params, *, n_layers, H, emb_dim, vocab,
                   weight_dtype=jnp.bfloat16):
    Vp = _round_up(vocab, LANE)
    prep = {"n_layers": n_layers, "H": H, "emb_dim": emb_dim,
            "vocab": vocab, "Vp": Vp}

    # Embedding table stays at its natural shape; bf16 for the one-hot matmul.
    prep["embedding"] = params["embedding"].astype(weight_dtype)      # (V, E)

    # Packed GRU weights: gate columns [r | z | n_x | n_h] (4H lanes, = 128
    # here); x / h halves kept as separate matrices (two accumulated dots).
    gru_wx, gru_wh, gru_b = [], [], []
    for l in range(n_layers):
        in_dim = emb_dim if l == 0 else H
        wx = params[f"w_ih_{l}"].T      # (in_dim, 3H), gate cols [r | z | n]
        wh = params[f"w_hh_{l}"].T      # (H, 3H)
        b_ih, b_hh = params[f"b_ih_{l}"], params[f"b_hh_{l}"]

        Wx = jnp.zeros((in_dim, 4 * H), jnp.float32)
        Wx = Wx.at[:, 0:3 * H].set(wx)                       # r | z | n_x
        Wh = jnp.zeros((H, 4 * H), jnp.float32)
        Wh = Wh.at[:, 0:2 * H].set(wh[:, 0:2 * H])           # r | z
        Wh = Wh.at[:, 3 * H:4 * H].set(wh[:, 2 * H:3 * H])   # n_h

        b = jnp.zeros((1, 4 * H), jnp.float32)
        b = b.at[0, 0:2 * H].set(b_ih[0:2 * H] + b_hh[0:2 * H])   # r,z biases
        b = b.at[0, 2 * H:3 * H].set(b_ih[2 * H:3 * H])           # n input bias
        b = b.at[0, 3 * H:4 * H].set(b_hh[2 * H:3 * H])           # n hidden bias

        gru_wx.append(Wx.astype(weight_dtype))
        gru_wh.append(Wh.astype(weight_dtype))
        gru_b.append(b)                                          # biases f32
    prep["gru_wx"], prep["gru_wh"], prep["gru_b"] = gru_wx, gru_wh, gru_b

    # Collapse the three activation-free Linears into one matmul (exact algebra,
    # done once in f32), then pad vocab lanes to 128 and cast weights to bf16.
    w1t, w2t, w3t = params["lin1_w"].T, params["lin2_w"].T, params["lin3_w"].T
    wv = w1t @ w2t @ w3t                                          # (H, V)
    bv = params["lin1_b"] @ w2t @ w3t + params["lin2_b"] @ w3t + params["lin3_b"]
    prep["vocab_w"] = (jnp.zeros((H, Vp), jnp.float32)
                       .at[:, :vocab].set(wv)).astype(weight_dtype)
    prep["vocab_b"] = jnp.zeros((1, Vp), jnp.float32).at[0, :vocab].set(bv)
    return prep


# --------------------------------------------------------------------------
# Wrappers
# --------------------------------------------------------------------------
def pad_hidden(hidden):
    """(L, B, H) -> persistent padded layout (L, Bp, H); do this ONCE."""
    L, B, H = hidden.shape
    Bp = _round_up(max(B, SUBLANE), SUBLANE)
    return jnp.pad(hidden, ((0, 0), (0, Bp - B), (0, 0)))


def rnn_decoder_decode(tokens, hidden_padded, prep):
    """Run T teacher-forced decoder steps in ONE pallas_call.

    tokens:        (T, B) int32
    hidden_padded: (L, Bp, H) f32 persistent padded layout (see pad_hidden)
    returns:       logits (T, B, vocab) f32, new hidden_padded (L, Bp, H) f32
    """
    T, B = tokens.shape
    n_layers, H = prep["n_layers"], prep["H"]
    vocab, Vp = prep["vocab"], prep["Vp"]
    L, Bp, H_ = hidden_padded.shape
    assert L == n_layers and H_ == H

    kernel = _make_decoder_kernel(n_layers=n_layers, H=H, B=B, Bp=Bp,
                                  vocab=vocab, Vp=Vp)

    def const_spec(shape):
        # Constant block index -> DMA'd into VMEM once, resident for all steps.
        return pl.BlockSpec(shape, lambda t, tok: (0,) * len(shape))

    in_specs = [const_spec(hidden_padded.shape),
                const_spec(prep["embedding"].shape)]
    operands = [hidden_padded, prep["embedding"]]
    for l in range(n_layers):
        for name in ("gru_wx", "gru_wh", "gru_b"):
            arr = prep[name][l]
            in_specs.append(const_spec(arr.shape))
            operands.append(arr)
    for name in ("vocab_w", "vocab_b"):
        arr = prep[name]
        in_specs.append(const_spec(arr.shape))
        operands.append(arr)

    out_shape = (
        jax.ShapeDtypeStruct((T, Bp, Vp), jnp.float32),      # per-step logits
        jax.ShapeDtypeStruct((n_layers, Bp, H), jnp.float32) # final hidden
    )
    out_specs = (
        pl.BlockSpec((1, Bp, Vp), lambda t, tok: (t, 0, 0)),
        pl.BlockSpec((n_layers, Bp, H), lambda t, tok: (0, 0, 0)),  # resident carry
    )

    grid_spec = pltpu.PrefetchScalarGridSpec(
        num_scalar_prefetch=1,            # token ids -> SMEM, read in-kernel
        grid=(T,),
        in_specs=in_specs,
        out_specs=out_specs,
    )

    logits_pad, hid_out = pl.pallas_call(
        kernel,
        grid_spec=grid_spec,
        out_shape=out_shape,
        compiler_params=pltpu.CompilerParams(
            dimension_semantics=("arbitrary",)),   # steps carry hidden state
    )(tokens.astype(jnp.int32), *operands)

    return logits_pad[:, :B, :vocab], hid_out


def rnn_decoder_step(token_ids, hidden_padded, prep):
    """Exactly module.forward(): one token per batch element, one GRU step."""
    logits, hid_out = rnn_decoder_decode(token_ids[None, :], hidden_padded, prep)
    return logits[0], hid_out


# --------------------------------------------------------------------------
# Pure-JAX reference (mirrors PyTorch semantics, un-fused, f32) for validation
# --------------------------------------------------------------------------
def rnn_decoder_step_ref(token_ids, hidden, params, *, n_layers, H, vocab):
    x = jnp.take(params["embedding"], token_ids, axis=0)
    new_h = []
    for l in range(n_layers):
        h = hidden[l]
        gi = x @ params[f"w_ih_{l}"].T + params[f"b_ih_{l}"]
        gh = h @ params[f"w_hh_{l}"].T + params[f"b_hh_{l}"]
        r = jax.nn.sigmoid(gi[:, :H] + gh[:, :H])
        z = jax.nn.sigmoid(gi[:, H:2 * H] + gh[:, H:2 * H])
        n = jnp.tanh(gi[:, 2 * H:] + r * gh[:, 2 * H:])
        h_new = (1.0 - z) * n + z * h
        new_h.append(h_new)
        x = h_new
    o = x @ params["lin1_w"].T + params["lin1_b"]
    o = o @ params["lin2_w"].T + params["lin2_b"]
    pred = o @ params["lin3_w"].T + params["lin3_b"]
    return pred, jnp.stack(new_h, axis=0)


def init_params(key, *, vocab, emb_dim, H, n_layers):
    """Deterministic synthetic parameters with PyTorch-native shapes."""
    ks = iter(jax.random.split(key, 64))
    p = {}
    p["embedding"] = 0.1 * jax.random.normal(next(ks), (vocab, emb_dim), jnp.float32)
    for l in range(n_layers):
        in_dim = emb_dim if l == 0 else H
        p[f"w_ih_{l}"] = 0.1 * jax.random.normal(next(ks), (3 * H, in_dim), jnp.float32)
        p[f"w_hh_{l}"] = 0.1 * jax.random.normal(next(ks), (3 * H, H), jnp.float32)
        p[f"b_ih_{l}"] = 0.05 * jax.random.normal(next(ks), (3 * H,), jnp.float32)
        p[f"b_hh_{l}"] = 0.05 * jax.random.normal(next(ks), (3 * H,), jnp.float32)
    p["lin1_w"] = 0.1 * jax.random.normal(next(ks), (2 * H, H), jnp.float32)
    p["lin1_b"] = 0.05 * jax.random.normal(next(ks), (2 * H,), jnp.float32)
    p["lin2_w"] = 0.1 * jax.random.normal(next(ks), (4 * H, 2 * H), jnp.float32)
    p["lin2_b"] = 0.05 * jax.random.normal(next(ks), (4 * H,), jnp.float32)
    p["lin3_w"] = 0.1 * jax.random.normal(next(ks), (vocab, 4 * H), jnp.float32)
    p["lin3_b"] = 0.05 * jax.random.normal(next(ks), (vocab,), jnp.float32)
    return p


if __name__ == "__main__":
    # Module config: cn_vocab_size=64, emb_dim=32, hid_dim=16 -> H = hid_dim*2 = 32,
    # n_layers=2, dropout=0.0 (eval), isatt=False.
    VOCAB, EMB, HID, LAYERS, BATCH, STEPS = 64, 32, 16, 2, 2, 6
    H = HID * 2

    key = jax.random.PRNGKey(0)
    k_par, k_tok, k_hid = jax.random.split(key, 3)
    params = init_params(k_par, vocab=VOCAB, emb_dim=EMB, H=H, n_layers=LAYERS)

    tokens = jax.random.randint(k_tok, (STEPS, BATCH), 0, VOCAB, dtype=jnp.int32)
    hidden0 = 0.1 * jax.random.normal(k_hid, (LAYERS, BATCH, H), jnp.float32)

    # One-time weight fusion / packing / bf16 cast, and one-time hidden padding.
    prep = prepare_params(params, n_layers=LAYERS, H=H, emb_dim=EMB, vocab=VOCAB)
    hidden0_pad = pad_hidden(hidden0)

    # ---- single step: exact module.forward() equivalent (T = 1) -------------
    pred1, hid1_pad = rnn_decoder_step(tokens[0], hidden0_pad, prep)
    jax.block_until_ready((pred1, hid1_pad))
    pred1_ref, hid1_ref = rnn_decoder_step_ref(tokens[0], hidden0, params,
                                               n_layers=LAYERS, H=H, vocab=VOCAB)
    assert pred1.shape == (BATCH, VOCAB)
    assert hid1_pad.shape == (LAYERS, _round_up(max(BATCH, SUBLANE), SUBLANE), H)
    # Tolerance reflects bf16 weights on the MXU (f32 accumulation) vs f32 ref.
    assert jnp.allclose(pred1, pred1_ref, atol=5e-2, rtol=0)
    assert jnp.allclose(hid1_pad[:, :BATCH, :], hid1_ref, atol=5e-2, rtol=0)

    # ---- multi-step teacher-forced decode: ONE pallas_call for all steps ----
    logits, hidT_pad = rnn_decoder_decode(tokens, hidden0_pad, prep)
    jax.block_until_ready((logits, hidT_pad))

    h_ref = hidden0
    logits_ref_steps = []
    for t in range(STEPS):
        p_ref, h_ref = rnn_decoder_step_ref(tokens[t], h_ref, params,
                                            n_layers=LAYERS, H=H, vocab=VOCAB)
        logits_ref_steps.append(p_ref)
    logits_ref = jnp.stack(logits_ref_steps, axis=0)

    assert logits.shape == (STEPS, BATCH, VOCAB)
    assert jnp.allclose(logits, logits_ref, atol=5e-2, rtol=0)
    assert jnp.allclose(hidT_pad[:, :BATCH, :], h_ref, atol=5e-2, rtol=0)

    print("KERNEL_OK")
</pallas_src>

<mosaic_0001>
module attributes {stable_mosaic.version = 11 : i64} {
  func.func @kernel(%arg0: i32, %arg1: memref<1x2xi32, #tpu.memory_space<smem>>, %arg2: memref<2x8x32xf32, #tpu.memory_space<vmem>>, %arg3: memref<64x32xbf16, #tpu.memory_space<vmem>>, %arg4: memref<32x128xbf16, #tpu.memory_space<vmem>>, %arg5: memref<32x128xbf16, #tpu.memory_space<vmem>>, %arg6: memref<1x128xf32, #tpu.memory_space<vmem>>, %arg7: memref<32x128xbf16, #tpu.memory_space<vmem>>, %arg8: memref<32x128xbf16, #tpu.memory_space<vmem>>, %arg9: memref<1x128xf32, #tpu.memory_space<vmem>>, %arg10: memref<32x128xbf16, #tpu.memory_space<vmem>>, %arg11: memref<1x128xf32, #tpu.memory_space<vmem>>, %arg12: memref<1x8x128xf32, #tpu.memory_space<vmem>>, %arg13: memref<2x8x32xf32, #tpu.memory_space<vmem>>) attributes {dimension_semantics = [#tpu.dimension_semantics<arbitrary>], iteration_bounds = array<i64: 1>, scalar_prefetch = 1 : i64, scratch_operands = 0 : i64, tpu.core_type = #tpu.core_type<tc>, window_params = [{pipeline_mode = #tpu.pipeline_mode<synchronous>, transform_indices = @transform_0, window_bounds = array<i64: 2, 8, 32>}, {pipeline_mode = #tpu.pipeline_mode<synchronous>, transform_indices = @transform_1, window_bounds = array<i64: 64, 32>}, {pipeline_mode = #tpu.pipeline_mode<synchronous>, transform_indices = @transform_2, window_bounds = array<i64: 32, 128>}, {pipeline_mode = #tpu.pipeline_mode<synchronous>, transform_indices = @transform_3, window_bounds = array<i64: 32, 128>}, {pipeline_mode = #tpu.pipeline_mode<synchronous>, transform_indices = @transform_4, window_bounds = array<i64: 1, 128>}, {pipeline_mode = #tpu.pipeline_mode<synchronous>, transform_indices = @transform_5, window_bounds = array<i64: 32, 128>}, {pipeline_mode = #tpu.pipeline_mode<synchronous>, transform_indices = @transform_6, window_bounds = array<i64: 32, 128>}, {pipeline_mode = #tpu.pipeline_mode<synchronous>, transform_indices = @transform_7, window_bounds = array<i64: 1, 128>}, {pipeline_mode = #tpu.pipeline_mode<synchronous>, transform_indices = @transform_8, window_bounds = array<i64: 32, 128>}, {pipeline_mode = #tpu.pipeline_mode<synchronous>, transform_indices = @transform_9, window_bounds = array<i64: 1, 128>}, {transform_indices = @transform_10, window_bounds = array<i64: 1, 8, 128>}, {pipeline_mode = #tpu.pipeline_mode<synchronous>, transform_indices = @transform_11, window_bounds = array<i64: 2, 8, 32>}]} {
    %c0_i32 = arith.constant 0 : i32
    %0 = arith.cmpi eq, %arg0, %c0_i32 : i32
    %1 = arith.extui %0 : i1 to i32
    %c0_i32_0 = arith.constant 0 : i32
    %2 = arith.cmpi ne, %1, %c0_i32_0 : i32
    scf.if %2 {
      %c0_49 = arith.constant 0 : index
      %c0_50 = arith.constant 0 : index
      %c0_51 = arith.constant 0 : index
      %110 = vector.load %arg2[%c0_49, %c0_50, %c0_51] : memref<2x8x32xf32, #tpu.memory_space<vmem>>, vector<2x8x32xf32>
      %c0_52 = arith.constant 0 : index
      %c0_53 = arith.constant 0 : index
      %c0_54 = arith.constant 0 : index
      %111 = vector.load %arg13[%c0_52, %c0_53, %c0_54] : memref<2x8x32xf32, #tpu.memory_space<vmem>>, vector<2x8x32xf32>
      tpu.vector_store %arg13[%c0_52, %c0_53, %c0_54], %110 {strides = array<i32>} : memref<2x8x32xf32, #tpu.memory_space<vmem>>, vector<2x8x32xf32>,
    } else {
    }
    %3 = tpu.iota {dimensions = array<i32: 0>} : vector<8x64xi32>
    %4 = tpu.iota {dimensions = array<i32: 1>} : vector<8x64xi32>
    %cst = arith.constant 0.000000e+00 : f32
    %5 = vector.broadcast %cst : f32 to vector<8x64xf32>
    %6 = arith.index_cast %arg0 : i32 to index
    %c0 = arith.constant 0 : index
    %7 = memref.load %arg1[%6, %c0] : memref<1x2xi32, #tpu.memory_space<smem>>
    %c0_i32_1 = arith.constant 0 : i32
    %8 = vector.broadcast %c0_i32_1 : i32 to vector<8x64xi32>
    %9 = arith.cmpi eq, %3, %8 : vector<8x64xi32>
    %10 = vector.broadcast %7 : i32 to vector<8x64xi32>
    %11 = arith.cmpi eq, %4, %10 : vector<8x64xi32>
    %12 = arith.andi %9, %11 : vector<8x64xi1>
    %cst_2 = arith.constant 1.000000e+00 : f32
    %13 = vector.broadcast %cst_2 : f32 to vector<8x64xf32>
    %14 = arith.select %12, %13, %5 : vector<8x64xi1>, vector<8x64xf32>
    %15 = arith.index_cast %arg0 : i32 to index
    %c1 = arith.constant 1 : index
    %16 = memref.load %arg1[%15, %c1] : memref<1x2xi32, #tpu.memory_space<smem>>
    %c1_i32 = arith.constant 1 : i32
    %17 = vector.broadcast %c1_i32 : i32 to vector<8x64xi32>
    %18 = arith.cmpi eq, %3, %17 : vector<8x64xi32>
    %19 = vector.broadcast %16 : i32 to vector<8x64xi32>
    %20 = arith.cmpi eq, %4, %19 : vector<8x64xi32>
    %21 = arith.andi %18, %20 : vector<8x64xi1>
    %cst_3 = arith.constant 1.000000e+00 : f32
    %22 = vector.broadcast %cst_3 : f32 to vector<8x64xf32>
    %23 = arith.select %21, %22, %14 : vector<8x64xi1>, vector<8x64xf32>
    %24 = arith.truncf %23 : vector<8x64xf32> to vector<8x64xbf16>
    %c0_4 = arith.constant 0 : index
    %c0_5 = arith.constant 0 : index
    %25 = vector.load %arg3[%c0_4, %c0_5] : memref<64x32xbf16, #tpu.memory_space<vmem>>, vector<64x32xbf16>
    %cst_6 = arith.constant dense<0.000000e+00> : vector<8x32xf32>
    %26 = tpu.matmul %24, %25, %cst_6 {dimension_numbers = #tpu.dot_dimension_numbers<[1], [0], [0], [1], [0, 0, 1, 1], [], []>} : vector<8x64xbf16>, vector<64x32xbf16>, vector<8x32xf32> -> vector<8x32xf32>
    %c0_7 = arith.constant 0 : index
    %c0_8 = arith.constant 0 : index
    %c0_9 = arith.constant 0 : index
    %27 = vector.load %arg13[%c0_7, %c0_8, %c0_9] : memref<2x8x32xf32, #tpu.memory_space<vmem>>, vector<1x8x32xf32>
    %28 = vector.shape_cast %27 : vector<1x8x32xf32> to vector<8x32xf32>
    %29 = arith.truncf %26 : vector<8x32xf32> to vector<8x32xbf16>
    %c0_10 = arith.constant 0 : index
    %c0_11 = arith.constant 0 : index
    %30 = vector.load %arg4[%c0_10, %c0_11] : memref<32x128xbf16, #tpu.memory_space<vmem>>, vector<32x128xbf16>
    %cst_12 = arith.constant dense<0.000000e+00> : vector<8x128xf32>
    %31 = tpu.matmul %29, %30, %cst_12 {dimension_numbers = #tpu.dot_dimension_numbers<[1], [0], [0], [1], [0, 0, 1, 1], [], []>} : vector<8x32xbf16>, vector<32x128xbf16>, vector<8x128xf32> -> vector<8x128xf32>
    %32 = arith.truncf %28 : vector<8x32xf32> to vector<8x32xbf16>
    %c0_13 = arith.constant 0 : index
    %c0_14 = arith.constant 0 : index
    %33 = vector.load %arg5[%c0_13, %c0_14] : memref<32x128xbf16, #tpu.memory_space<vmem>>, vector<32x128xbf16>
    %cst_15 = arith.constant dense<0.000000e+00> : vector<8x128xf32>
    %34 = tpu.matmul %32, %33, %cst_15 {dimension_numbers = #tpu.dot_dimension_numbers<[1], [0], [0], [1], [0, 0, 1, 1], [], []>} : vector<8x32xbf16>, vector<32x128xbf16>, vector<8x128xf32> -> vector<8x128xf32>
    %35 = arith.addf %31, %34 : vector<8x128xf32>
    %c0_16 = arith.constant 0 : index
    %c0_17 = arith.constant 0 : index
    %36 = vector.load %arg6[%c0_16, %c0_17] : memref<1x128xf32, #tpu.memory_space<vmem>>, vector<1x128xf32>
    %37 = vector.broadcast %36 : vector<1x128xf32> to vector<8x128xf32>
    %38 = arith.addf %35, %37 : vector<8x128xf32>
    %39 = vector.extract_strided_slice %38 {offsets = [0, 0], sizes = [8, 32], strides = [1, 1]} : vector<8x128xf32> to vector<8x32xf32>
    %40 = arith.negf %39 : vector<8x32xf32>
    %41 = math.exp %40 : vector<8x32xf32>
    %cst_18 = arith.constant 1.000000e+00 : f32
    %42 = vector.broadcast %cst_18 : f32 to vector<8x32xf32>
    %43 = arith.addf %42, %41 : vector<8x32xf32>
    %44 = arith.divf %42, %43 : vector<8x32xf32>
    %45 = vector.extract_strided_slice %38 {offsets = [0, 32], sizes = [8, 32], strides = [1, 1]} : vector<8x128xf32> to vector<8x32xf32>
    %46 = arith.negf %45 : vector<8x32xf32>
    %47 = math.exp %46 : vector<8x32xf32>
    %cst_19 = arith.constant 1.000000e+00 : f32
    %48 = vector.broadcast %cst_19 : f32 to vector<8x32xf32>
    %49 = arith.addf %48, %47 : vector<8x32xf32>
    %50 = arith.divf %48, %49 : vector<8x32xf32>
    %51 = vector.extract_strided_slice %38 {offsets = [0, 64], sizes = [8, 32], strides = [1, 1]} : vector<8x128xf32> to vector<8x32xf32>
    %52 = vector.extract_strided_slice %38 {offsets = [0, 96], sizes = [8, 32], strides = [1, 1]} : vector<8x128xf32> to vector<8x32xf32>
    %53 = arith.mulf %44, %52 : vector<8x32xf32>
    %54 = arith.addf %51, %53 : vector<8x32xf32>
    %55 = math.tanh %54 : vector<8x32xf32>
    %cst_20 = arith.constant 1.000000e+00 : f32
    %56 = vector.broadcast %cst_20 : f32 to vector<8x32xf32>
    %57 = arith.subf %56, %50 : vector<8x32xf32>
    %58 = arith.mulf %57, %55 : vector<8x32xf32>
    %59 = arith.mulf %50, %28 : vector<8x32xf32>
    %60 = arith.addf %58, %59 : vector<8x32xf32>
    %c0_21 = arith.constant 0 : index
    %c0_22 = arith.constant 0 : index
    %c0_23 = arith.constant 0 : index
    %61 = vector.load %arg13[%c0_21, %c0_22, %c0_23] : memref<2x8x32xf32, #tpu.memory_space<vmem>>, vector<1x8x32xf32>
    %62 = vector.shape_cast %61 : vector<1x8x32xf32> to vector<8x32xf32>
    %63 = vector.shape_cast %60 : vector<8x32xf32> to vector<1x8x32xf32>
    tpu.vector_store %arg13[%c0_21, %c0_22, %c0_23], %63 {strides = array<i32>} : memref<2x8x32xf32, #tpu.memory_space<vmem>>, vector<1x8x32xf32>,
    %c1_24 = arith.constant 1 : index
    %c0_25 = arith.constant 0 : index
    %c0_26 = arith.constant 0 : index
    %64 = vector.load %arg13[%c1_24, %c0_25, %c0_26] : memref<2x8x32xf32, #tpu.memory_space<vmem>>, vector<1x8x32xf32>
    %65 = vector.shape_cast %64 : vector<1x8x32xf32> to vector<8x32xf32>
    %66 = arith.truncf %60 : vector<8x32xf32> to vector<8x32xbf16>
    %c0_27 = arith.constant 0 : index
    %c0_28 = arith.constant 0 : index
    %67 = vector.load %arg7[%c0_27, %c0_28] : memref<32x128xbf16, #tpu.memory_space<vmem>>, vector<32x128xbf16>
    %cst_29 = arith.constant dense<0.000000e+00> : vector<8x128xf32>
    %68 = tpu.matmul %66, %67, %cst_29 {dimension_numbers = #tpu.dot_dimension_numbers<[1], [0], [0], [1], [0, 0, 1, 1], [], []>} : vector<8x32xbf16>, vector<32x128xbf16>, vector<8x128xf32> -> vector<8x128xf32>
    %69 = arith.truncf %65 : vector<8x32xf32> to vector<8x32xbf16>
    %c0_30 = arith.constant 0 : index
    %c0_31 = arith.constant 0 : index
    %70 = vector.load %arg8[%c0_30, %c0_31] : memref<32x128xbf16, #tpu.memory_space<vmem>>, vector<32x128xbf16>
    %cst_32 = arith.constant dense<0.000000e+00> : vector<8x128xf32>
    %71 = tpu.matmul %69, %70, %cst_32 {dimension_numbers = #tpu.dot_dimension_numbers<[1], [0], [0], [1], [0, 0, 1, 1], [], []>} : vector<8x32xbf16>, vector<32x128xbf16>, vector<8x128xf32> -> vector<8x128xf32>
    %72 = arith.addf %68, %71 : vector<8x128xf32>
    %c0_33 = arith.constant 0 : index
    %c0_34 = arith.constant 0 : index
    %73 = vector.load %arg9[%c0_33, %c0_34] : memref<1x128xf32, #tpu.memory_space<vmem>>, vector<1x128xf32>
    %74 = vector.broadcast %73 : vector<1x128xf32> to vector<8x128xf32>
    %75 = arith.addf %72, %74 : vector<8x128xf32>
    %76 = vector.extract_strided_slice %75 {offsets = [0, 0], sizes = [8, 32], strides = [1, 1]} : vector<8x128xf32> to vector<8x32xf32>
    %77 = arith.negf %76 : vector<8x32xf32>
    %78 = math.exp %77 : vector<8x32xf32>
    %cst_35 = arith.constant 1.000000e+00 : f32
    %79 = vector.broadcast %cst_35 : f32 to vector<8x32xf32>
    %80 = arith.addf %79, %78 : vector<8x32xf32>
    %81 = arith.divf %79, %80 : vector<8x32xf32>
    %82 = vector.extract_strided_slice %75 {offsets = [0, 32], sizes = [8, 32], strides = [1, 1]} : vector<8x128xf32> to vector<8x32xf32>
    %83 = arith.negf %82 : vector<8x32xf32>
    %84 = math.exp %83 : vector<8x32xf32>
    %cst_36 = arith.constant 1.000000e+00 : f32
    %85 = vector.broadcast %cst_36 : f32 to vector<8x32xf32>
    %86 = arith.addf %85, %84 : vector<8x32xf32>
    %87 = arith.divf %85, %86 : vector<8x32xf32>
    %88 = vector.extract_strided_slice %75 {offsets = [0, 64], sizes = [8, 32], strides = [1, 1]} : vector<8x128xf32> to vector<8x32xf32>
    %89 = vector.extract_strided_slice %75 {offsets = [0, 96], sizes = [8, 32], strides = [1, 1]} : vector<8x128xf32> to vector<8x32xf32>
    %90 = arith.mulf %81, %89 : vector<8x32xf32>
    %91 = arith.addf %88, %90 : vector<8x32xf32>
    %92 = math.tanh %91 : vector<8x32xf32>
    %cst_37 = arith.constant 1.000000e+00 : f32
    %93 = vector.broadcast %cst_37 : f32 to vector<8x32xf32>
    %94 = arith.subf %93, %87 : vector<8x32xf32>
    %95 = arith.mulf %94, %92 : vector<8x32xf32>
    %96 = arith.mulf %87, %65 : vector<8x32xf32>
    %97 = arith.addf %95, %96 : vector<8x32xf32>
    %c1_38 = arith.constant 1 : index
    %c0_39 = arith.constant 0 : index
    %c0_40 = arith.constant 0 : index
    %98 = vector.load %arg13[%c1_38, %c0_39, %c0_40] : memref<2x8x32xf32, #tpu.memory_space<vmem>>, vector<1x8x32xf32>
    %99 = vector.shape_cast %98 : vector<1x8x32xf32> to vector<8x32xf32>
    %100 = vector.shape_cast %97 : vector<8x32xf32> to vector<1x8x32xf32>
    tpu.vector_store %arg13[%c1_38, %c0_39, %c0_40], %100 {strides = array<i32>} : memref<2x8x32xf32, #tpu.memory_space<vmem>>, vector<1x8x32xf32>,
    %101 = arith.truncf %97 : vector<8x32xf32> to vector<8x32xbf16>
    %c0_41 = arith.constant 0 : index
    %c0_42 = arith.constant 0 : index
    %102 = vector.load %arg10[%c0_41, %c0_42] : memref<32x128xbf16, #tpu.memory_space<vmem>>, vector<32x128xbf16>
    %cst_43 = arith.constant dense<0.000000e+00> : vector<8x128xf32>
    %103 = tpu.matmul %101, %102, %cst_43 {dimension_numbers = #tpu.dot_dimension_numbers<[1], [0], [0], [1], [0, 0, 1, 1], [], []>} : vector<8x32xbf16>, vector<32x128xbf16>, vector<8x128xf32> -> vector<8x128xf32>
    %c0_44 = arith.constant 0 : index
    %c0_45 = arith.constant 0 : index
    %104 = vector.load %arg11[%c0_44, %c0_45] : memref<1x128xf32, #tpu.memory_space<vmem>>, vector<1x128xf32>
    %105 = vector.broadcast %104 : vector<1x128xf32> to vector<8x128xf32>
    %106 = arith.addf %103, %105 : vector<8x128xf32>
    %c0_46 = arith.constant 0 : index
    %c0_47 = arith.constant 0 : index
    %c0_48 = arith.constant 0 : index
    %107 = vector.load %arg12[%c0_46, %c0_47, %c0_48] : memref<1x8x128xf32, #tpu.memory_space<vmem>>, vector<1x8x128xf32>
    %108 = vector.shape_cast %107 : vector<1x8x128xf32> to vector<8x128xf32>
    %109 = vector.shape_cast %106 : vector<8x128xf32> to vector<1x8x128xf32>
    tpu.vector_store %arg12[%c0_46, %c0_47, %c0_48], %109 {strides = array<i32>} : memref<1x8x128xf32, #tpu.memory_space<vmem>>, vector<1x8x128xf32>,
    return
  }
  func.func @transform_0(%arg0: i32, %arg1: memref<1x2xi32, #tpu.memory_space<smem>>) -> (i32, i32, i32) {
    %c0_i32 = arith.constant 0 : i32
    %c0_i32_0 = arith.constant 0 : i32
    %c0_i32_1 = arith.constant 0 : i32
    %c0_i32_2 = arith.constant 0 : i32
    return %c0_i32, %c0_i32_0, %c0_i32_1 : i32, i32, i32
  }
  func.func @transform_1(%arg0: i32, %arg1: memref<1x2xi32, #tpu.memory_space<smem>>) -> (i32, i32) {
    %c0_i32 = arith.constant 0 : i32
    %c0_i32_0 = arith.constant 0 : i32
    %c0_i32_1 = arith.constant 0 : i32
    return %c0_i32, %c0_i32_0 : i32, i32
  }
  func.func @transform_2(%arg0: i32, %arg1: memref<1x2xi32, #tpu.memory_space<smem>>) -> (i32, i32) {
    %c0_i32 = arith.constant 0 : i32
    %c0_i32_0 = arith.constant 0 : i32
    %c0_i32_1 = arith.constant 0 : i32
    return %c0_i32, %c0_i32_0 : i32, i32
  }
  func.func @transform_3(%arg0: i32, %arg1: memref<1x2xi32, #tpu.memory_space<smem>>) -> (i32, i32) {
    %c0_i32 = arith.constant 0 : i32
    %c0_i32_0 = arith.constant 0 : i32
    %c0_i32_1 = arith.constant 0 : i32
    return %c0_i32, %c0_i32_0 : i32, i32
  }
  func.func @transform_4(%arg0: i32, %arg1: memref<1x2xi32, #tpu.memory_space<smem>>) -> (i32, i32) {
    %c0_i32 = arith.constant 0 : i32
    %c0_i32_0 = arith.constant 0 : i32
    %c0_i32_1 = arith.constant 0 : i32
    return %c0_i32, %c0_i32_0 : i32, i32
  }
  func.func @transform_5(%arg0: i32, %arg1: memref<1x2xi32, #tpu.memory_space<smem>>) -> (i32, i32) {
    %c0_i32 = arith.constant 0 : i32
    %c0_i32_0 = arith.constant 0 : i32
    %c0_i32_1 = arith.constant 0 : i32
    return %c0_i32, %c0_i32_0 : i32, i32
  }
  func.func @transform_6(%arg0: i32, %arg1: memref<1x2xi32, #tpu.memory_space<smem>>) -> (i32, i32) {
    %c0_i32 = arith.constant 0 : i32
    %c0_i32_0 = arith.constant 0 : i32
    %c0_i32_1 = arith.constant 0 : i32
    return %c0_i32, %c0_i32_0 : i32, i32
  }
  func.func @transform_7(%arg0: i32, %arg1: memref<1x2xi32, #tpu.memory_space<smem>>) -> (i32, i32) {
    %c0_i32 = arith.constant 0 : i32
    %c0_i32_0 = arith.constant 0 : i32
    %c0_i32_1 = arith.constant 0 : i32
    return %c0_i32, %c0_i32_0 : i32, i32
  }
  func.func @transform_8(%arg0: i32, %arg1: memref<1x2xi32, #tpu.memory_space<smem>>) -> (i32, i32) {
    %c0_i32 = arith.constant 0 : i32
    %c0_i32_0 = arith.constant 0 : i32
    %c0_i32_1 = arith.constant 0 : i32
    return %c0_i32, %c0_i32_0 : i32, i32
  }
  func.func @transform_9(%arg0: i32, %arg1: memref<1x2xi32, #tpu.memory_space<smem>>) -> (i32, i32) {
    %c0_i32 = arith.constant 0 : i32
    %c0_i32_0 = arith.constant 0 : i32
    %c0_i32_1 = arith.constant 0 : i32
    return %c0_i32, %c0_i32_0 : i32, i32
  }
  func.func @transform_10(%arg0: i32, %arg1: memref<1x2xi32, #tpu.memory_space<smem>>) -> (i32, i32, i32) {
    %c0_i32 = arith.constant 0 : i32
    %c0_i32_0 = arith.constant 0 : i32
    %c0_i32_1 = arith.constant 0 : i32
    return %arg0, %c0_i32, %c0_i32_0 : i32, i32, i32
  }
  func.func @transform_11(%arg0: i32, %arg1: memref<1x2xi32, #tpu.memory_space<smem>>) -> (i32, i32, i32) {
    %c0_i32 = arith.constant 0 : i32
    %c0_i32_0 = arith.constant 0 : i32
    %c0_i32_1 = arith.constant 0 : i32
    %c0_i32_2 = arith.constant 0 : i32
    return %c0_i32, %c0_i32_0, %c0_i32_1 : i32, i32, i32
  }
}

</mosaic_0001>

<bundles_post_ra>
// kernel: tpu_custom_call.1
= control target key start
LH: loop header
LB: loop body
LE: loop exit
PB: predicated region body
PF: predicated region fallthrough
CT: control target
= control target key end

     0   :  { %s742_s24 = smov [#allocation3]   ;;  %s904_s0 = inlined_call_operand.hbm [shape: s32[1,2], index: 0, kind: input, shape index: {}]   ;;  %s905_s1 = inlined_call_operand.vmem [shape: f32[2,8,32], index: 1, kind: input, shape index: {}]   ;;  %s906_s2 = inlined_call_operand.vmem [shape: bf16[64,32], index: 2, kind: input, shape index: {}]   ;;  %s907_s3 = inlined_call_operand.vmem [shape: bf16[32,128], index: 3, kind: input, shape index: {}]   ;;  %s908_s4 = inlined_call_operand.vmem [shape: bf16[32,128], index: 4, kind: input, shape index: {}]   ;;  %s909_s5 = inlined_call_operand.vmem [shape: f32[1,128], index: 5, kind: input, shape index: {}]   ;;  %s910_s6 = inlined_call_operand.hbm [shape: bf16[32,128], index: 6, kind: input, shape index: {}]   ;;  %s911_s7 = inlined_call_operand.hbm [shape: bf16[32,128], index: 7, kind: input, shape index: {}]   ;;  %s912_s8 = inlined_call_operand.vmem [shape: f32[1,128], index: 8, kind: input, shape index: {}]   ;;  %s913_s9 = inlined_call_operand.hbm [shape: bf16[32,128], index: 9, kind: input, shape index: {}]   ;;  %s914_s10 = inlined_call_operand.vmem [shape: f32[1,128], index: 10, kind: input, shape index: {}]   ;;  %s915_s11 = inlined_call_operand.hbm [shape: f32[1,8,128], index: 11, kind: output, shape index: {0}]   ;;  %s916_s12 = inlined_call_operand.hbm [shape: f32[2,8,32], index: 12, kind: output, shape index: {1}]  }
   0x1   :  { %s19_s23 = sshll.u32 %s904_s0, 4  ;;  %s20_s23 = int_to_ptr.hbm [resolvable:$true] %s19_s23 }
   0x2   :  { %22 = dma.hbm_to_smem %s20_s23, 16, %s742_s24, [#allocation2] }
   0x3   :  { %732 = dma.done.wait [#allocation2], 16 }
   0x4   :  { %733 = vsyncadd [#allocation2], 4294967280 }
   0x5   :  { %25 = sfence }
   0x6   :  { %26 = vsyncpa [#allocation5], 0 }
   0x7   :  { %27 = vsyncpa [#allocation8], 0 }
   0x8   :  { %28 = vsyncpa [#allocation6], 0 }
   0x9   :  { %29 = vsyncpa [#allocation12], 0  ;;  %s57_s27 = sshll.u32 %s911_s7, 4  ;;  %s743_s28 = smov [#allocation7]   ;;  %s58_s27 = int_to_ptr.hbm [resolvable:$true] %s57_s27 }
   0xa   :  { %s59_s29 = sshll.u32 %s743_s28, 4  ;;  %s44_s13 = sshll.u32 %s910_s6, 4  ;;  %s60_s29 = int_to_ptr.vmem [resolvable:$true] %s59_s29  ;;  %s45_s13 = int_to_ptr.hbm [resolvable:$true] %s44_s13 }
   0xb   :  { %s744_s14 = smov 64   ;;  %s745_s15 = smov 4  }
   0xc   :  { %65 = dma.hbm_to_vmem [thread:$0]  %s58_s27, 256, %s60_s29, [#allocation8], %s744_s14, %s744_s14, %s745_s15  }
   0xd   :  { %s746_s16 = smov [#allocation4]   ;;  %s72_s7 = sshll.u32 %s913_s9, 4  ;;  %s73_s7 = int_to_ptr.hbm [resolvable:$true] %s72_s7 }
   0xe   :  { %s46_s17 = sshll.u32 %s746_s16, 4  ;;  %s747_s20 = smov [#allocation9]   ;;  %s47_s17 = int_to_ptr.vmem [resolvable:$true] %s46_s17 }
   0xf   :  { %52 = dma.hbm_to_vmem [thread:$0]  %s45_s13, 256, %s47_s17, [#allocation5], %s744_s14, %s744_s14, %s745_s15  }
  0x10   :  { %s74_s21 = sshll.u32 %s747_s20, 4  ;;  %s75_s21 = int_to_ptr.vmem [resolvable:$true] %s74_s21 }
  0x11   :  { %80 = dma.hbm_to_vmem [thread:$0]  %s73_s7, 256, %s75_s21, [#allocation8], %s744_s14, %s744_s14, %s745_s15  }
  0x12   :  { %734 = dma.done.wait [#allocation5], 256  }
  0x13   :  { %735 = vsyncadd [#allocation5], 4294967040 }
  0x14   :  { %736 = dma.done.wait [#allocation8], 512  }
  0x15   :  { %737 = vsyncadd [#allocation8], 4294966784  ;;  %v105_v0 = vlaneseq  ;;  %s110_s6 = sld [smem:[#allocation3]]  ;;  %v561_v3 = vld [vmem:[%s906_s2 + $0x18] sm:$0xff]  ;;  %v565_v6 = vld [vmem:[%s908_s4 + $0x8] sm:$0xff]  ;;  %v748_v11 = vmov 0.0  }
  0x16   :  { %s493_s22 = sld [smem:[#allocation3 + $0x1]]  ;;  %v563_v7 = vld [vmem:[%s907_s3 + $0x8] sm:$0xff]  ;;  %164 = vmatpush.bf16.msra.mxu0 %v561_v3  ;;  %v560_v8 = vld [vmem:[%s906_s2 + $0x10] sm:$0xff]  ;;  %206 = vmatpush.bf16.msra.mxu1 %v565_v6  ;;  %v564_v9 = vld [vmem:[%s908_s4] sm:$0xff]  ;;  %vm156_vm6 = vcmask 523264   ;;  %vm102_vm7 = vcmask 261120  }
  0x17   :  { %v106_v1 = vshrl.u32 %v105_v0, 7  ;;  %v108_v2 = vand.u32 127, %v105_v0  ;;  %234 = vmatpush.bf16.msra.mxu2 %v563_v7  ;;  %v559_v10 = vld [vmem:[%s906_s2 + $0x8] sm:$0xff]  ;;  %v558_v13 = vld [vmem:[%s906_s2] sm:$0xff]  ;;  %v569_v48 = vld [vmem:[#allocation7 + $0x8] sm:$0xff]  ;;  %s474_s24 = sshll.u32 %s916_s12, 4  ;;  %s475_s24 = int_to_ptr.hbm [resolvable:$true] %s474_s24 }
  0x18   :  { %v100_v16 = vld [vmem:[%s905_s1] sm:$0xff]  ;;  %v567_v49 = vld [vmem:[#allocation4 + $0x8] sm:$0xff]  ;;  %326 = vmatpush.bf16.msra.mxu3 %v569_v48  ;;  %v568_v51 = vld [vmem:[#allocation7] sm:$0xff]  ;;  %s752_s25 = smov 128   ;;  %s753_s26 = smov 8  }
  0x19   :  { %vm111_vm0 = vcmp.eq.s32.totalorder %v106_v1, 0  ;;  %vm118_vm3 = vcmp.eq.s32.totalorder %v106_v1, 1  ;;  %103 = vst.msk [vmem:[#allocation11] sm:$0xff] %vm102_vm7, %v100_v16  ;;  %v562_v17 = vld [vmem:[%s907_s3] sm:$0xff]  ;;  %s749_s3 = smov 32   ;;  %v101_v50 = vld [vmem:[%s905_s1 + $0x8] sm:$0xff] }
  0x1a   :  { %165 = vmatpush.bf16.msra.mxu0 %v560_v8  ;;  %207 = vmatpush.bf16.msra.mxu1 %v564_v9  ;;  %v585_v25 = vld [vmem:[%s909_s5] ss:$0 sm:$0xff]  ;;  %s750_s5 = smov 96   ;;  %104 = vst.msk [vmem:[#allocation11 + $0x8] sm:$0xff] %vm102_vm7, %v101_v50  ;;  %s754_s29 = smov [#allocation10]  }
  0x1b   :  { %v112_v4 = vstv %s110_s6  ;;  %235 = vmatpush.bf16.msra.mxu2 %v562_v17  ;;  %v566_v52 = vld [vmem:[#allocation4] sm:$0xff]  ;;  %s462_s30 = sshll.u32 %s754_s29, 4  ;;  %s464_s15 = sshll.u32 %s915_s11, 4  ;;  %s463_s30 = int_to_ptr.vmem [resolvable:$true] %s462_s30  ;;  %s465_s15 = int_to_ptr.hbm [resolvable:$true] %s464_s15 }
  0x1c   :  { %vm113_vm1 = vcmp.eq.s32.totalorder %v108_v2, %v112_v4  ;;  %v119_v5 = vstv %s493_s22  ;;  %327 = vmatpush.bf16.msra.mxu3 %v568_v51  ;;  %v586_v1 = vld [vmem:[%s912_s8] ss:$0 sm:$0xff]  ;;  %s751_s8 = smov [#allocation11]  }
  0x1d   :  { %vm114_vm2 = vmand %vm111_vm0, %vm113_vm1  ;;  %vm120_vm4 = vcmp.eq.s32.totalorder %v108_v2, %v119_v5 }
  0x1e   :  { %v115_v12 = vsel %vm114_vm2, 1.0, %v748_v11  ;;  %vm121_vm5 = vmand %vm118_vm3, %vm120_vm4  ;;  %166 = vmatpush.bf16.msra.mxu0 %v559_v10  ;;  %357 = vmatpush.bf16.msrb.mxu1 %v567_v49 }
  0x1f   :  { %v122_v14 = vsel %vm121_vm5, 1.0, %v115_v12 }
  0x20   :  { %v123_v15 = vpack.c.bf16 %v122_v14, %v122_v14  ;;  %v173_v18 = vld [vmem:[#allocation11] sm:$0xff] }
  0x21   :  { %v179_v19 = vpack.c.bf16 %v173_v18, %v173_v18  ;;  %v294_v53 = vld [vmem:[#allocation11 + $0x8] sm:$0xff] }
  0x22   :  { %167 = vmatpush.bf16.msra.mxu0 %v558_v13  ;;  %358 = vmatpush.bf16.msrb.mxu1 %v566_v52  ;;  %v300_v54 = vpack.c.bf16 %v294_v53, %v294_v53 }
  0x23   :  { %519 = vmatmul.msk.bf16.vlgmr.msra.gmra.mxu1 %vm102_vm7, %v179_v19 }
  0x24   :  { %538 = vmatmul.msk.bf16.vlgmr.msra.gmra.mxu3 %vm102_vm7, %v300_v54 }
  0x25   :  { %510 = vmatmul.msk.bf16.vlgmr.msra.gmra.mxu0 %vm156_vm6, %v123_v15 }
  0xa0   :  { %v209_v23 = vpop.f32.mrf.mxu1 }
  0xa2   :  { %v169_v20 = vpop.f32.mrf.mxu0 }
  0xa3   :  { %v174_v21 = vpack.c.bf16 %v169_v20, %v169_v20 }
  0xa5   :  { %528 = vmatmul.msk.bf16.vlgmr.msra.gmra.mxu2 %vm102_vm7, %v174_v21 }
  0xa7   :  { %v329_v63 = vpop.f32.mrf.mxu3 }
  0xa8   :  { %v211_v24 = vpop.f32.mrf.mxu1 }
  0xaa   :  { %v171_v22 = vpop.f32.mrf.mxu0 }
  0xaf   :  { %v331_v0 = vpop.f32.mrf.mxu3 }
 0x128   :  { %v237_v26 = vpop.f32.mrf.mxu2 }
 0x129   :  { %v238_v27 = vadd.f32 %v237_v26, %v209_v23 }
 0x12b   :  { %v245_v28 = vadd.f32 %v585_v25, %v238_v27 }
 0x12d   :  { %266 = vrot.lane.b32.xlu0 %v245_v28, %s749_s3  ;;  %v529_v30 = vmul.f32 -1.442695, %v245_v28 }
 0x12f   :  { %588 = vpow2.f32 %v529_v30 }
 0x130   :  { %v239_v29 = vpop.f32.mrf.mxu2 }
 0x135   :  { %v589_v31 = vpop.eup %588 }
 0x136   :  { %v249_v32 = vadd.f32 1.0, %v589_v31 }
 0x138   :  { %590 = vrcp.f32 %v249_v32  ;;  %v261_v38 = vand.u32 2147483648, %v249_v32  ;;  %vm255_vm9 = vweird.f32 %v249_v32  ;;  %v259_v39 = vand.u32 2147483647, %v249_v32 }
 0x13a   :  { %v262_v41 = vor.u32 1.1754944e-38, %v261_v38  ;;  %vm260_vm11 = vcmp.eq.f32.partialorder %v259_v39, 8.507059e+37 }
 0x13e   :  { %v591_v33 = vpop.eup %590 }
 0x13f   :  { %v251_v34 = vmul.f32 %v591_v33, %v249_v32  ;;  %vm256_vm8 = vweird.f32 %v591_v33  ;;  %v571_v32 = vld [vmem:[#allocation9 + $0x8] sm:$0xff] }
 0x140   :  { %vm257_vm10 = vmor %vm255_vm9, %vm256_vm8  ;;  %449 = vmatpush.bf16.msrb.mxu2 %v571_v32 }
 0x141   :  { %v252_v35 = vsub.f32 1.0, %v251_v34 }
 0x143   :  { %v253_v36 = vmul.f32 %v591_v33, %v252_v35 }
 0x145   :  { %v254_v37 = vadd.f32 %v591_v33, %v253_v36  ;;  %v587_v36 = vld [vmem:[%s914_s10] ss:$0 sm:$0xff] }
 0x147   :  { %v258_v40 = vsel %vm257_vm10, %v591_v33, %v254_v37  ;;  %v570_v33 = vld [vmem:[#allocation9] sm:$0xff] }
 0x148   :  { %v263_v43 = vsel %vm260_vm11, %v262_v41, %v258_v40  ;;  %450 = vmatpush.bf16.msrb.mxu2 %v570_v33 }
 0x149   :  { %v276_v56 = vsub.f32 1.0, %v263_v43 }
 0x19f   :  { %v267_v42 = vpop.permute.xlu0 %266 }
 0x1a0   :  { %v269_v44 = vmul.f32 %v267_v42, %v263_v43 }
 0x1a2   :  { %271 = vrot.lane.b32.xlu0 %v269_v44, %s744_s14 }
 0x214   :  { %v272_v45 = vpop.permute.xlu0 %271 }
 0x215   :  { %v274_v46 = vadd.f32 %v272_v45, %v245_v28 }
 0x217   :  { %592 = vtanh.f32 %v274_v46 }
 0x21d   :  { %v593_v47 = vpop.eup %592 }
 0x21e   :  { %278 = vrot.lane.b32.xlu1 %v593_v47, %s750_s5 }
 0x226   :  { %283 = vrot.lane.b32.xlu1 %v173_v18, %s749_s3 }
 0x290   :  { %v279_v55 = vpop.permute.xlu1 %278 }
 0x291   :  { %v281_v58 = vmul.f32 %v279_v55, %v276_v56 }
 0x298   :  { %v284_v57 = vpop.permute.xlu1 %283 }
 0x299   :  { %v286_v59 = vmul.f32 %v284_v57, %v263_v43 }
 0x29b   :  { %v287_v60 = vadd.f32 %v286_v59, %v281_v58 }
 0x29d   :  { %v295_v61 = vpack.c.bf16 %v287_v60, %v287_v60 }
 0x29f   :  { %334 = vrot.lane.b32.xlu2 %v295_v61, %s750_s5 }
 0x2f9   :  { %v335_v62 = vpop.permute.xlu2 %334 }
 0x2fa   :  { %547 = vmatmul.msk.bf16.vlgmr.msrb.gmra.mxu1 %vm102_vm7, %v335_v62 }
 0x377   :  { %v360_v2 = vpop.f32.mrf.mxu1 }
 0x378   :  { %v361_v3 = vadd.f32 %v360_v2, %v329_v63 }
 0x37a   :  { %v368_v4 = vadd.f32 %v586_v1, %v361_v3 }
 0x37c   :  { %389 = vrot.lane.b32.xlu2 %v368_v4, %s749_s3  ;;  %v548_v6 = vmul.f32 -1.442695, %v368_v4 }
 0x37e   :  { %594 = vpow2.f32 %v548_v6 }
 0x37f   :  { %v362_v5 = vpop.f32.mrf.mxu1 }
 0x384   :  { %406 = vrot.lane.b32.xlu2 %v294_v53, %s749_s3  ;;  %v595_v7 = vpop.eup %594 }
 0x385   :  { %v372_v8 = vadd.f32 1.0, %v595_v7 }
 0x387   :  { %596 = vrcp.f32 %v372_v8  ;;  %v384_v14 = vand.u32 2147483648, %v372_v8  ;;  %vm378_vm13 = vweird.f32 %v372_v8  ;;  %v382_v15 = vand.u32 2147483647, %v372_v8 }
 0x389   :  { %v385_v17 = vor.u32 1.1754944e-38, %v384_v14  ;;  %vm383_vm15 = vcmp.eq.f32.partialorder %v382_v15, 8.507059e+37 }
 0x38d   :  { %v597_v9 = vpop.eup %596 }
 0x38e   :  { %v374_v10 = vmul.f32 %v597_v9, %v372_v8  ;;  %vm379_vm12 = vweird.f32 %v597_v9 }
 0x38f   :  { %vm380_vm14 = vmor %vm378_vm13, %vm379_vm12 }
 0x390   :  { %v375_v11 = vsub.f32 1.0, %v374_v10 }
 0x392   :  { %v376_v12 = vmul.f32 %v597_v9, %v375_v11 }
 0x394   :  { %v377_v13 = vadd.f32 %v597_v9, %v376_v12 }
 0x396   :  { %v381_v16 = vsel %vm380_vm14, %v597_v9, %v377_v13 }
 0x397   :  { %v386_v19 = vsel %vm383_vm15, %v385_v17, %v381_v16 }
 0x398   :  { %v399_v25 = vsub.f32 1.0, %v386_v19 }
 0x3d6   :  { %v390_v18 = vpop.permute.xlu2 %389 }
 0x3d7   :  { %v392_v20 = vmul.f32 %v390_v18, %v386_v19 }
 0x3d9   :  { %394 = vrot.lane.b32.xlu0 %v392_v20, %s744_s14  ;;  %s472_s14 = sshll.u32 %s751_s8, 4  ;;  %s473_s14 = int_to_ptr.vmem [resolvable:$true] %s472_s14 }
 0x3de   :  { %v407_v24 = vpop.permute.xlu2 %406 }
 0x3df   :  { %v409_v27 = vmul.f32 %v407_v24, %v386_v19 }
 0x44b   :  { %v395_v21 = vpop.permute.xlu0 %394 }
 0x44c   :  { %v397_v22 = vadd.f32 %v395_v21, %v368_v4 }
 0x44e   :  { %598 = vtanh.f32 %v397_v22 }
 0x454   :  { %v599_v23 = vpop.eup %598 }
 0x455   :  { %401 = vrot.lane.b32.xlu1 %v599_v23, %s750_s5 }
 0x45d   :  { %289 = vrot.lane.b32.xlu1 %v287_v60, %s750_s5 }
 0x4c7   :  { %v402_v26 = vpop.permute.xlu1 %401 }
 0x4c8   :  { %v404_v28 = vmul.f32 %v402_v26, %v399_v25 }
 0x4ca   :  { %v410_v29 = vadd.f32 %v409_v27, %v404_v28 }
 0x4cc   :  { %412 = vrot.lane.b32.xlu2 %v410_v29, %s750_s5  ;;  %v416_v30 = vpack.c.bf16 %v410_v29, %v410_v29 }
 0x4ce   :  { %426 = vrot.lane.b32.xlu0 %v416_v30, %s750_s5 }
 0x4cf   :  { %v290_v31 = vpop.permute.xlu1 %289 }
 0x4d0   :  { %292 = vst.msk [vmem:[#allocation11] sm:$0xff] %vm102_vm7, %v290_v31 }
 0x526   :  { %v413_v34 = vpop.permute.xlu2 %412 }
 0x527   :  { %415 = vst.msk [vmem:[#allocation11 + $0x8] sm:$0xff] %vm102_vm7, %v413_v34 }
 0x528   :  { %480 = dma.vmem_to_hbm [thread:$0]  %s473_s14, 256, %s475_s24, [#allocation12], %s752_s25, %s752_s25, %s753_s26  }
 0x540   :  { %v427_v35 = vpop.permute.xlu0 %426 }
 0x541   :  { %557 = vmatmul.msk.bf16.vlgmr.msrb.gmra.mxu2 %vm102_vm7, %v427_v35 }
 0x5c4   :  { %v452_v37 = vpop.f32.mrf.mxu2 }
 0x5c5   :  { %v453_v38 = vadd.f32 %v587_v36, %v452_v37 }
 0x5c7   :  { %456 = vst [vmem:[#allocation10] sm:$0xff] %v453_v38 }
 0x5c8   :  { %467 = dma.vmem_to_hbm [thread:$0]  %s463_s30, 128, %s465_s15, [#allocation6]  }
 0x5cc   :  { %v454_v39 = vpop.f32.mrf.mxu2 }
 0x5cd   :  { %738 = dma.done.wait [#allocation6], 128  }
 0x5ce   :  { %739 = vsyncadd [#allocation6], 4294967168 }
 0x5cf   :  { %740 = dma.done.wait [#allocation12], 256  }
 0x5d0   :  { %741 = vsyncadd [#allocation12], 4294967040 }
 0x5d1   :  { %489 = vsyncpa [#allocation5], 1 }
 0x5d2   :  { %490 = vsyncpa [#allocation8], 1 }
 0x5d3   :  { %491 = vsyncpa [#allocation6], 1 }
 0x5d4   :  { %492 = vsyncpa [#allocation12], 1 }

</bundles_post_ra>
